<compile_context>
chip_gen: v5e
topology: v5e:2x2
jax: 0.10.0
libtpu: 0.0.40
codegen_flags: <defaults>
</compile_context>

<pallas_src>
import jax
import jax.numpy as jnp
from jax.experimental import pallas as pl
from jax.experimental.pallas import tpu as pltpu


def _round_up(n: int, m: int) -> int:
    return ((n + m - 1) // m) * m


def _round_down(n: int, m: int) -> int:
    return (n // m) * m


def logistic_regression_forward(x, w, b, *,
                                x_block_bytes=8 * 1024 * 1024,
                                max_rows_per_block=32768):
    """Pallas equivalent of LogisticRegression.forward.

    Returns (sigmoid(x @ w.T + b) with shape (B, 1), mean of the raw logits).
    """
    B, D = x.shape
    assert w.shape == (1, D) and b.shape == (1, 1)

    # ---- Row-block size selection ------------------------------------------
    # Target ~x_block_bytes of x per block (amortizes the ~0.35us/step pipeline
    # overhead); rows lane-aligned (multiple of 128) in the multi-block case so
    # the (1, TB) logit row is made of full 128-lane vregs.
    tb_cap = max(_round_down(x_block_bytes // (D * 4), 128), 128)
    tb_cap = min(tb_cap, max_rows_per_block)
    if B < 256:
        # Single small block; the (1, TB) output block equals the full array dims.
        TB = max(_round_up(B, 8), 8)
        n_blocks = 1
    else:
        # Keep >= 2 blocks so the "parallel" axis can span v7x's 2 TensorCores,
        # and balance block sizes so the partial last block stays nearly full.
        n_blocks = max(2, pl.cdiv(B, tb_cap))
        TB = _round_up(pl.cdiv(B, n_blocks), 128)
        n_blocks = pl.cdiv(B, TB)

    # ---- VMEM budget ----------------------------------------------------------
    # Double-buffered x blocks + sublane-padded (1, TB) output blocks + slack;
    # cap below v7x's 64 MiB physical VMEM.
    est = 2 * (TB * D * 4 + 8 * TB * 4) + (1 << 20)
    vmem_limit = int(min(max(2 * est, 32 << 20), 48 << 20))

    def kernel(x_ref, w_ref, b_ref, sig_ref, psum_ref):
        # x_ref:    (TB, D)     f32 VMEM   block of input rows
        # w_ref:    (1, D)      f32 VMEM   nn.Linear weight (resident every step)
        # b_ref:    (1, 1)      f32 SMEM   nn.Linear bias (scalar)
        # sig_ref:  (1, TB)     f32 VMEM   sigmoid(logits), lane-major
        # psum_ref: (1, 1, 128) f32 VMEM   per-block sum of pre-bias logits
        #
        # M=1 contraction w @ x_block.T: logits[0, j] = dot(x[j, :], w).
        # The result is lane-major, so the sigmoid store is lane-dense and there
        # is no relayout and no block-sized elementwise temporary.
        logits = jax.lax.dot_general(
            w_ref[...], x_ref[...],
            dimension_numbers=(((1,), (1,)), ((), ())),
            preferred_element_type=jnp.float32,
        )                                                   # (1, TB)

        bias = b_ref[0, 0]                                  # scalar from SMEM
        sig_ref[...] = jax.nn.sigmoid(logits + bias)        # exp on EUP

        # Partial sum of the pre-bias logits for the mean.  Columns whose global
        # row index is >= B come from the unspecified padding of a partial block
        # and must not pollute the sum.
        col = jax.lax.broadcasted_iota(jnp.int32, (1, TB), 1)
        valid = (col + pl.program_id(0) * TB) < B
        blk_sum = jnp.sum(jnp.where(valid, logits, 0.0), axis=1, keepdims=True)
        psum_ref[...] = jnp.broadcast_to(blk_sum.reshape(1, 1, 1), psum_ref.shape)

    sig_rows, psum = pl.pallas_call(
        kernel,
        grid=(n_blocks,),
        in_specs=[
            pl.BlockSpec((TB, D), lambda i: (i, 0)),            # x: one row-block/step
            pl.BlockSpec((1, D), lambda i: (0, 0)),             # w: resident every step
            pl.BlockSpec((1, 1), lambda i: (0, 0),
                         memory_space=pltpu.MemorySpace.SMEM),  # bias scalar in SMEM
        ],
        out_specs=(
            pl.BlockSpec((1, TB), lambda i: (0, i)),            # lane-dense sigmoid row
            pl.BlockSpec((1, 1, 128), lambda i: (i, 0, 0)),     # per-block logit sums
        ),
        out_shape=(
            jax.ShapeDtypeStruct((1, n_blocks * TB), jnp.float32),
            jax.ShapeDtypeStruct((n_blocks, 1, 128), jnp.float32),
        ),
        compiler_params=pltpu.CompilerParams(
            dimension_semantics=("parallel",),   # batch blocks independent -> 2-TC split
            vmem_limit_bytes=vmem_limit,
        ),
    )(x, w, b)

    sig = sig_rows[0, :B].reshape(B, 1)
    logit_mean = jnp.sum(psum[:, 0, 0]) / jnp.float32(B) + b[0, 0]
    return sig, logit_mean


if __name__ == "__main__":
    key = jax.random.PRNGKey(0)
    kx, kw, kb = jax.random.split(key, 3)

    B, D = 8, 32  # small synthetic shapes: batch=8, input_shape=32

    # Synthetic "standard-scaled" inputs.
    x = jax.random.normal(kx, (B, D), dtype=jnp.float32)

    # Deterministic nn.Linear(D, 1) init: U(-1/sqrt(D), 1/sqrt(D)), like PyTorch default.
    bound = 1.0 / jnp.sqrt(jnp.float32(D))
    w = jax.random.uniform(kw, (1, D), dtype=jnp.float32, minval=-bound, maxval=bound)
    b = jax.random.uniform(kb, (1, 1), dtype=jnp.float32, minval=-bound, maxval=bound)

    sig, logit_mean = jax.jit(logistic_regression_forward)(x, w, b)
    jax.block_until_ready((sig, logit_mean))

    # Reference check in plain JAX.  Tolerance allows for the MXU f32 dot path
    # (may use split-precision passes) vs. the XLA reference matmul.
    logits_ref = x @ w.T + b
    sig_ref = jax.nn.sigmoid(logits_ref)
    mean_ref = jnp.mean(logits_ref)
    assert sig.shape == (B, 1)
    assert jnp.allclose(sig, sig_ref, atol=5e-3, rtol=5e-3)
    assert jnp.allclose(logit_mean, mean_ref, atol=5e-3, rtol=5e-3)

    print("KERNEL_OK")
</pallas_src>

<mosaic_0001>
module attributes {stable_mosaic.version = 11 : i64} {
  func.func @kernel(%arg0: i32, %arg1: memref<8x32xf32, #tpu.memory_space<vmem>>, %arg2: memref<1x32xf32, #tpu.memory_space<vmem>>, %arg3: memref<1x1xf32, #tpu.memory_space<smem>>, %arg4: memref<1x8xf32, #tpu.memory_space<vmem>>, %arg5: memref<1x1x128xf32, #tpu.memory_space<vmem>>) attributes {dimension_semantics = [#tpu.dimension_semantics<parallel>], iteration_bounds = array<i64: 1>, scalar_prefetch = 0 : i64, scratch_operands = 0 : i64, tpu.core_type = #tpu.core_type<tc>, window_params = [{transform_indices = @transform_0, window_bounds = array<i64: 8, 32>}, {pipeline_mode = #tpu.pipeline_mode<synchronous>, transform_indices = @transform_1, window_bounds = array<i64: 1, 32>}, {transform_indices = @transform_2, window_bounds = array<i64: 1, 1>}, {transform_indices = @transform_3, window_bounds = array<i64: 1, 8>}, {transform_indices = @transform_4, window_bounds = array<i64: 1, 1, 128>}]} {
    %c0 = arith.constant 0 : index
    %c0_0 = arith.constant 0 : index
    %0 = vector.load %arg2[%c0, %c0_0] : memref<1x32xf32, #tpu.memory_space<vmem>>, vector<1x32xf32>
    %c0_1 = arith.constant 0 : index
    %c0_2 = arith.constant 0 : index
    %1 = vector.load %arg1[%c0_1, %c0_2] : memref<8x32xf32, #tpu.memory_space<vmem>>, vector<8x32xf32>
    %cst = arith.constant dense<0.000000e+00> : vector<1x8xf32>
    %2 = tpu.matmul %0, %1, %cst {dimension_numbers = #tpu.dot_dimension_numbers<[1], [1], [0], [0], [0, 0, 1, 0], [], []>} : vector<1x32xf32>, vector<8x32xf32>, vector<1x8xf32> -> vector<1x8xf32>
    %c0_3 = arith.constant 0 : index
    %c0_4 = arith.constant 0 : index
    %3 = memref.load %arg3[%c0_3, %c0_4] : memref<1x1xf32, #tpu.memory_space<smem>>
    %4 = vector.broadcast %3 : f32 to vector<1x8xf32>
    %5 = arith.addf %2, %4 : vector<1x8xf32>
    %6 = arith.negf %5 : vector<1x8xf32>
    %7 = math.exp %6 : vector<1x8xf32>
    %cst_5 = arith.constant 1.000000e+00 : f32
    %8 = vector.broadcast %cst_5 : f32 to vector<1x8xf32>
    %9 = arith.addf %8, %7 : vector<1x8xf32>
    %10 = arith.divf %8, %9 : vector<1x8xf32>
    %c0_6 = arith.constant 0 : index
    %c0_7 = arith.constant 0 : index
    %11 = vector.load %arg4[%c0_6, %c0_7] : memref<1x8xf32, #tpu.memory_space<vmem>>, vector<1x8xf32>
    tpu.vector_store %arg4[%c0_6, %c0_7], %10 {strides = array<i32>} : memref<1x8xf32, #tpu.memory_space<vmem>>, vector<1x8xf32>,
    %12 = tpu.iota {dimensions = array<i32: 1>} : vector<1x8xi32>
    %c8_i32 = arith.constant 8 : i32
    %13 = arith.muli %arg0, %c8_i32 : i32
    %14 = vector.broadcast %13 : i32 to vector<1x8xi32>
    %15 = arith.addi %12, %14 : vector<1x8xi32>
    %c8_i32_8 = arith.constant 8 : i32
    %16 = vector.broadcast %c8_i32_8 : i32 to vector<1x8xi32>
    %17 = arith.cmpi slt, %15, %16 : vector<1x8xi32>
    %cst_9 = arith.constant 0.000000e+00 : f32
    %18 = vector.broadcast %cst_9 : f32 to vector<1x8xf32>
    %19 = arith.select %17, %2, %18 : vector<1x8xi1>, vector<1x8xf32>
    %cst_10 = arith.constant dense<0.000000e+00> : vector<1xf32>
    %20 = vector.multi_reduction <add>, %19, %cst_10 [1] : vector<1x8xf32> to vector<1xf32>
    %21 = vector.shape_cast %20 : vector<1xf32> to vector<1x1xf32>
    %22 = vector.shape_cast %21 : vector<1x1xf32> to vector<1x1x1xf32>
    %23 = vector.shape_cast %22 : vector<1x1x1xf32> to vector<1x1x1xf32>
    %24 = vector.broadcast %23 : vector<1x1x1xf32> to vector<1x1x128xf32>
    %c0_11 = arith.constant 0 : index
    %c0_12 = arith.constant 0 : index
    %c0_13 = arith.constant 0 : index
    %25 = vector.load %arg5[%c0_11, %c0_12, %c0_13] : memref<1x1x128xf32, #tpu.memory_space<vmem>>, vector<1x1x128xf32>
    tpu.vector_store %arg5[%c0_11, %c0_12, %c0_13], %24 {strides = array<i32>} : memref<1x1x128xf32, #tpu.memory_space<vmem>>, vector<1x1x128xf32>,
    return
  }
  func.func @transform_0(%arg0: i32) -> (i32, i32) {
    %c0_i32 = arith.constant 0 : i32
    %c0_i32_0 = arith.constant 0 : i32
    return %arg0, %c0_i32 : i32, i32
  }
  func.func @transform_1(%arg0: i32) -> (i32, i32) {
    %c0_i32 = arith.constant 0 : i32
    %c0_i32_0 = arith.constant 0 : i32
    %c0_i32_1 = arith.constant 0 : i32
    return %c0_i32, %c0_i32_0 : i32, i32
  }
  func.func @transform_2(%arg0: i32) -> (i32, i32) {
    %c0_i32 = arith.constant 0 : i32
    %c0_i32_0 = arith.constant 0 : i32
    %c0_i32_1 = arith.constant 0 : i32
    return %c0_i32, %c0_i32_0 : i32, i32
  }
  func.func @transform_3(%arg0: i32) -> (i32, i32) {
    %c0_i32 = arith.constant 0 : i32
    %c0_i32_0 = arith.constant 0 : i32
    return %c0_i32, %arg0 : i32, i32
  }
  func.func @transform_4(%arg0: i32) -> (i32, i32, i32) {
    %c0_i32 = arith.constant 0 : i32
    %c0_i32_0 = arith.constant 0 : i32
    %c0_i32_1 = arith.constant 0 : i32
    return %arg0, %c0_i32, %c0_i32_0 : i32, i32, i32
  }
}

</mosaic_0001>

<bundles_post_ra>
// kernel: logistic_regression_forward.1
= control target key start
LH: loop header
LB: loop body
LE: loop exit
PB: predicated region body
PF: predicated region fallthrough
CT: control target
= control target key end

     0   :  { %11 = vsyncpa [#allocation4], 0  ;;  %s222_s0 = inlined_call_operand.hbm [shape: f32[8,32], index: 0, kind: input, shape index: {}]   ;;  %s223_s1 = inlined_call_operand.vmem [shape: f32[1,32], index: 1, kind: input, shape index: {}]   ;;  %s224_s2 = inlined_call_operand.<no memory space> [shape: f32[1,1], index: 2, kind: input, shape index: {}]   ;;  %s225_s3 = inlined_call_operand.hbm [shape: f32[1,8], index: 3, kind: output, shape index: {0}]   ;;  %s226_s4 = inlined_call_operand.vmem [shape: f32[1,1,128], index: 4, kind: output, shape index: {1}]  }
   0x1   :  { %12 = vsyncpa [#allocation5], 0  ;;  %s18_s17 = sshll.u32 %s222_s0, 4  ;;  %s178_s18 = smov [#allocation3]   ;;  %s19_s17 = int_to_ptr.hbm [resolvable:$true] %s18_s17 }
   0x2   :  { %s20_s19 = sshll.u32 %s178_s18, 4  ;;  %s21_s19 = int_to_ptr.vmem [resolvable:$true] %s20_s19 }
   0x3   :  { %23 = dma.hbm_to_vmem [thread:$0]  %s19_s17, 128, %s21_s19, [#allocation4]  }
   0x4   :  { %174 = dma.done.wait [#allocation4], 128  }
   0x5   :  { %175 = vsyncadd [#allocation4], 4294967168  ;;  %vm34_vm0 = vcmask 261120   ;;  %v33_v0 = vld [vmem:[#allocation3] sm:$0xff]  ;;  %v85_v2 = vlaneseq  ;;  %v62_v4 = vstv %s224_s2  ;;  %vm83_vm2 = vcmask 57344   ;;  %s179_s0 = smov [#allocation6]  }
   0x6   :  { %117 = vmatpush.xpose.msk.msra.mxu0 %vm34_vm0, %v33_v0  ;;  %v32_v1 = vld [vmem:[%s223_s1] sm:$0x1]  ;;  %s101_s1 = sshll.u32 %s179_s0, 4  ;;  %s103_s25 = sshll.u32 %s225_s3, 4  ;;  %s102_s1 = int_to_ptr.vmem [resolvable:$true] %s101_s1  ;;  %s104_s25 = int_to_ptr.hbm [resolvable:$true] %s103_s25 }
   0x7   :  { %v86_v3 = vand.u32 127, %v85_v2 }
   0x9   :  { %118 = vmatmul.msk.f32.vlgmr.msra.gmra.mxu0 %vm34_vm0, %v32_v1  ;;  %vm90_vm1 = vcmp.lt.s32.totalorder %v86_v3, 8 }
  0x86   :  { %v58_v5 = vpop.f32.mrf.mxu0 }
  0x87   :  { %v63_v6 = vadd.f32 %v62_v4, %v58_v5  ;;  %v91_v7 = vsel %vm90_vm1, %v58_v5, 0.0 }
  0x88   :  { %v92_v8 = vsel %vm83_vm2, %v91_v7, 0.0 }
  0x89   :  { %v119_v9 = vmul.f32 -1.442695, %v63_v6  ;;  %93 = vadd.xlane.f32.xlu0 %v92_v8 }
  0x8b   :  { %122 = vpow2.f32 %v119_v9 }
  0x91   :  { %v123_v10 = vpop.eup %122 }
  0x92   :  { %v67_v11 = vadd.f32 1.0, %v123_v10 }
  0x94   :  { %124 = vrcp.f32 %v67_v11  ;;  %v79_v15 = vand.u32 2147483648, %v67_v11  ;;  %v77_v17 = vand.u32 2147483647, %v67_v11  ;;  %vm73_vm4 = vweird.f32 %v67_v11 }
  0x96   :  { %v80_v19 = vor.u32 1.1754944e-38, %v79_v15  ;;  %vm78_vm6 = vcmp.eq.f32.partialorder %v77_v17, 8.507059e+37 }
  0x9a   :  { %v125_v12 = vpop.eup %124 }
  0x9b   :  { %v69_v13 = vmul.f32 %v125_v12, %v67_v11  ;;  %vm74_vm3 = vweird.f32 %v125_v12 }
  0x9c   :  { %vm75_vm5 = vmor %vm73_vm4, %vm74_vm3 }
  0x9d   :  { %v70_v14 = vsub.f32 1.0, %v69_v13 }
  0x9f   :  { %v71_v16 = vmul.f32 %v125_v12, %v70_v14 }
  0xa1   :  { %v72_v18 = vadd.f32 %v125_v12, %v71_v16 }
  0xa3   :  { %v76_v20 = vsel %vm75_vm5, %v125_v12, %v72_v18 }
  0xa4   :  { %v81_v21 = vsel %vm78_vm6, %v80_v19, %v76_v20 }
  0xa5   :  { %84 = vst.msk [vmem:[#allocation6] sm:$0x1] %vm83_vm2, %v81_v21 }
  0xa6   :  { %106 = dma.vmem_to_hbm [thread:$0]  %s102_s1, 16, %s104_s25, [#allocation5]  }
  0xfc   :  { %v94_v22 = vpop.xlane.xlu0 %93 }
  0xfd   :  { %95 = vst [vmem:[%s226_s4] sm:$0x1] %v94_v22 }
  0xfe   :  { %176 = dma.done.wait [#allocation5], 16  }
  0xff   :  { %177 = vsyncadd [#allocation5], 4294967280 }
 0x100   :  { %115 = vsyncpa [#allocation4], 1 }
 0x101   :  { %116 = vsyncpa [#allocation5], 1 }

</bundles_post_ra>
